<compile_context>
chip_gen: v7x
topology: tpu7x:2x2x1
jax: 0.10.0
libtpu: 0.0.40
codegen_flags: <defaults>
</compile_context>

<pallas_src>
import functools
import math

import numpy as np
import jax
import jax.numpy as jnp
from jax import lax
from jax.experimental import pallas as pl
from jax.experimental.pallas import tpu as pltpu


_EPS = 1e-7
_LOG_EPS = float(math.log(_EPS))           # ~ -16.118
_LOG_1M_EPS = float(math.log(1.0 - _EPS))  # ~ -1e-7
_CHUNK = 8                                 # sublane rows per inner iteration


def _bce_clip_logits(z, t):
    """BCE(clip(sigmoid(z), 1e-7, 1-1e-7), t) computed from logits.

    The reference clip is a monotone clamp on p, so clamping log p and
    log(1-p) is exactly equivalent, while using one exp + one log."""
    sp = jnp.log(1.0 + jnp.exp(-jnp.abs(z)))          # softplus(-|z|)
    logp = jnp.minimum(z, 0.0) - sp                   # log sigmoid(z)
    log1mp = -jnp.maximum(z, 0.0) - sp                # log (1 - sigmoid(z))
    logp = jnp.clip(logp, _LOG_EPS, _LOG_1M_EPS)
    log1mp = jnp.clip(log1mp, _LOG_EPS, _LOG_1M_EPS)
    return -(t * logp + (1.0 - t) * log1mp)


def _round_up(x, m):
    return ((int(x) + m - 1) // m) * m


# ----------------------------------------------------------------------------
# Pallas kernel: dense confidence loss + get_ignore pass for one (b, o, i) tile
# ----------------------------------------------------------------------------
def _yolo_conf_kernel(gt_ref,      # SMEM f32 (bs, max_gt*5)  x1,y1,x2,y2,area
                      ngt_ref,     # SMEM i32 (bs,)           per-image GT count
                      obj_ref,     # SMEM i32 (bs, max_gt)    flat obj cell idx, -1 pad
                      pred_ref,    # VMEM (5, 1, tile_r, 128) x,y,w,h,conf logits
                      out_ref,     # VMEM (1, 1, 8, 128)      partial conf-loss sums
                      *, anchors, in_w, in_h, tile_r, n_inner, max_gt,
                      ignore_threshold):
    b = pl.program_id(0)
    o = pl.program_id(1)
    i = pl.program_id(2)

    @pl.when(i == 0)
    def _init():
        out_ref[...] = jnp.zeros_like(out_ref)

    n_gt = ngt_ref[b]
    cells = 3 * in_h * in_w
    hw = float(in_h * in_w)
    inv_hw = 1.0 / hw
    inv_w = 1.0 / float(in_w)
    aw0, ah0, aw1, ah1, aw2, ah2 = anchors          # compile-time constants
    base = (o * n_inner + i) * (tile_r * 128)
    n_chunks = tile_r // _CHUNK

    # zero-cost Ref views on the five planes
    x_ref = pred_ref.at[0, 0]
    y_ref = pred_ref.at[1, 0]
    w_ref = pred_ref.at[2, 0]
    h_ref = pred_ref.at[3, 0]
    c_ref = pred_ref.at[4, 0]

    def chunk_body(ci, acc):
        r0 = pl.multiple_of(ci * _CHUNK, _CHUNK)
        ridx = lax.broadcasted_iota(jnp.int32, (_CHUNK, 128), 0)
        cidx = lax.broadcasted_iota(jnp.int32, (_CHUNK, 128), 1)
        fi = base + (r0 + ridx) * 128 + cidx        # flat cell index in image
        valid = (fi < cells).astype(jnp.float32)
        f = fi.astype(jnp.float32)

        # rebuild grid_x / grid_y / anchor_w / anchor_h from the flat index
        a_f = jnp.floor((f + 0.5) * inv_hw)
        rem = f - a_f * hw
        grid_y = jnp.floor((rem + 0.5) * inv_w)
        grid_x = rem - grid_y * float(in_w)
        anchor_w = jnp.where(a_f < 0.5, aw0, jnp.where(a_f < 1.5, aw1, aw2))
        anchor_h = jnp.where(a_f < 0.5, ah0, jnp.where(a_f < 1.5, ah1, ah2))

        # decode prediction box (only needed for the ignore IoU test)
        px = jax.nn.sigmoid(x_ref[pl.ds(r0, _CHUNK), :]) + grid_x
        py = jax.nn.sigmoid(y_ref[pl.ds(r0, _CHUNK), :]) + grid_y
        pw = jnp.exp(w_ref[pl.ds(r0, _CHUNK), :]) * anchor_w
        ph = jnp.exp(h_ref[pl.ds(r0, _CHUNK), :]) * anchor_h
        p_x1 = px - pw * 0.5
        p_x2 = px + pw * 0.5
        p_y1 = py - ph * 0.5
        p_y2 = py + ph * 0.5
        p_area = pw * ph

        def gt_body(g, hit):
            # host-precomputed GT corners + area -> 5 SMEM scalar reads per GT
            g_x1 = gt_ref[b, 5 * g + 0]
            g_y1 = gt_ref[b, 5 * g + 1]
            g_x2 = gt_ref[b, 5 * g + 2]
            g_y2 = gt_ref[b, 5 * g + 3]
            g_area = gt_ref[b, 5 * g + 4]
            iw = jnp.maximum(jnp.minimum(g_x2, p_x2) - jnp.maximum(g_x1, p_x1), 0.0)
            ih = jnp.maximum(jnp.minimum(g_y2, p_y2) - jnp.maximum(g_y1, p_y1), 0.0)
            inter = iw * ih
            union = g_area + p_area - inter
            # iou > thr  <=>  inter > thr * union  (divide-free, NaN-free)
            return jnp.maximum(
                hit, (inter > ignore_threshold * union).astype(jnp.float32))

        hit = lax.fori_loop(0, n_gt, gt_body,
                            jnp.zeros((_CHUNK, 128), jnp.float32))

        # object mask reconstructed from prefetched flat cell indices
        mask = jnp.zeros((_CHUNK, 128), jnp.float32)
        for s in range(max_gt):
            mask = jnp.maximum(mask,
                               (fi == obj_ref[b, s]).astype(jnp.float32))

        noobj = valid * (1.0 - mask) * (1.0 - hit)
        conf_logit = c_ref[pl.ds(r0, _CHUNK), :]
        return acc + _bce_clip_logits(conf_logit, mask) * (mask + noobj)

    acc = lax.fori_loop(0, n_chunks, chunk_body,
                        jnp.zeros((_CHUNK, 128), jnp.float32))
    out_ref[0, 0] += acc


# ----------------------------------------------------------------------------
# pallas_call builder (cached per static config) + jitted device glue
# ----------------------------------------------------------------------------
@functools.lru_cache(maxsize=None)
def _build_loss_fn(num_classes, bs, in_h, in_w, tile_r, n_outer, n_inner,
                   r_pad, max_gt, max_obj, anchors, label_smooth,
                   ignore_threshold, lambda_conf, lambda_cls, lambda_loc):
    A = 5 + num_classes
    cells = 3 * in_h * in_w
    anchors_arr = np.asarray(anchors, np.float32).reshape(3, 2)

    kernel = functools.partial(
        _yolo_conf_kernel, anchors=anchors, in_w=in_w, in_h=in_h,
        tile_r=tile_r, n_inner=n_inner, max_gt=max_gt,
        ignore_threshold=float(ignore_threshold))

    grid_spec = pltpu.PrefetchScalarGridSpec(
        num_scalar_prefetch=3,                 # gt corners, gt counts, obj cells
        grid=(bs, n_outer, n_inner),
        in_specs=[
            pl.BlockSpec((5, 1, tile_r, 128),
                         lambda b, o, i, gt, ng, ob: (0, b, o * n_inner + i, 0)),
        ],
        out_specs=pl.BlockSpec((1, 1, 8, 128),
                               lambda b, o, i, gt, ng, ob: (b, o, 0, 0)),
    )

    call = pl.pallas_call(
        kernel,
        grid_spec=grid_spec,
        out_shape=jax.ShapeDtypeStruct((bs, n_outer, 8, 128), jnp.float32),
        compiler_params=pltpu.CompilerParams(
            dimension_semantics=("parallel", "parallel", "arbitrary"),
            vmem_limit_bytes=32 * 1024 * 1024),
    )

    def fn(raw_pred, gtc, ngt, obj_flat, obj_b, obj_a, obj_s, obj_cls,
           obj_tbox, obj_valid):
        pred_r = raw_pred.astype(jnp.float32).reshape(bs, 3, A, in_h * in_w)

        # ---- dense conf / ignore kernel: repack only the 5 box+conf planes --
        p5 = jnp.transpose(pred_r[:, :, :5, :], (2, 0, 1, 3)).reshape(5, bs, cells)
        p5 = jnp.pad(p5, ((0, 0), (0, 0), (0, r_pad * 128 - cells)))
        p5 = p5.reshape(5, bs, r_pad, 128)
        part = call(gtc, ngt, obj_flat, p5)              # (bs, n_outer, 8, 128)
        loss_conf = jnp.sum(part) * (1.0 / bs)

        # ---- sparse object-cell epilogue (<= max_obj rows): CIoU + class BCE -
        # advanced indices separated by a slice -> result shape (max_obj, A)
        attrs = pred_r[obj_b, obj_a, :, obj_s]
        gi = (obj_s % in_w).astype(jnp.float32)
        gj = (obj_s // in_w).astype(jnp.float32)
        anc = jnp.asarray(anchors_arr)
        aw = anc[obj_a, 0]
        ah = anc[obj_a, 1]
        px = jax.nn.sigmoid(attrs[:, 0]) + gi
        py = jax.nn.sigmoid(attrs[:, 1]) + gj
        pw = jnp.exp(attrs[:, 2]) * aw
        ph = jnp.exp(attrs[:, 3]) * ah
        tx, ty = obj_tbox[:, 0], obj_tbox[:, 1]
        tw, th = obj_tbox[:, 2], obj_tbox[:, 3]

        b1_x1, b1_x2 = px - pw * 0.5, px + pw * 0.5
        b1_y1, b1_y2 = py - ph * 0.5, py + ph * 0.5
        b2_x1, b2_x2 = tx - tw * 0.5, tx + tw * 0.5
        b2_y1, b2_y2 = ty - th * 0.5, ty + th * 0.5
        iw = jnp.maximum(jnp.minimum(b1_x2, b2_x2) - jnp.maximum(b1_x1, b2_x1), 0.0)
        ih = jnp.maximum(jnp.minimum(b1_y2, b2_y2) - jnp.maximum(b1_y1, b2_y1), 0.0)
        inter = iw * ih
        union = pw * ph + tw * th - inter
        iou = inter / jnp.maximum(union, 1e-6)
        center_d = (px - tx) ** 2 + (py - ty) ** 2
        ew = jnp.maximum(jnp.maximum(b1_x2, b2_x2) - jnp.minimum(b1_x1, b2_x1), 0.0)
        eh = jnp.maximum(jnp.maximum(b1_y2, b2_y2) - jnp.minimum(b1_y1, b2_y1), 0.0)
        ciou = iou - center_d / jnp.maximum(ew * ew + eh * eh, 1e-6)
        v = (4.0 / math.pi ** 2) * (
            jnp.arctan(pw / jnp.maximum(ph, 1e-6))
            - jnp.arctan(tw / jnp.maximum(th, 1e-6))) ** 2
        alpha = v / jnp.maximum(1.0 - iou + v, 1e-6)
        ciou = ciou - alpha * v
        box_loss_scale = 2.0 - (tw * (1.0 / in_w)) * (th * (1.0 / in_h))
        loss_loc = jnp.sum((1.0 - ciou) * box_loss_scale * obj_valid) * (1.0 / bs)

        y = jax.nn.one_hot(obj_cls, num_classes, dtype=jnp.float32)
        y = y * (1.0 - label_smooth) + label_smooth / num_classes
        cls_bce = _bce_clip_logits(attrs[:, 5:], y)
        loss_cls = jnp.sum(cls_bce * obj_valid[:, None]) * (1.0 / bs)

        loss = (loss_conf * lambda_conf + loss_cls * lambda_cls
                + loss_loc * lambda_loc)
        return loss, loss_conf, loss_cls, loss_loc

    return jax.jit(fn)


# ----------------------------------------------------------------------------
# Host-side glue (mirrors torch get_target / jaccard exactly; tiny & dynamic)
# ----------------------------------------------------------------------------
def _jaccard_np(box_a_xywh, box_b_xywh):
    a = np.zeros_like(box_a_xywh)
    b = np.zeros_like(box_b_xywh)
    a[:, 0] = box_a_xywh[:, 0] - box_a_xywh[:, 2] / 2
    a[:, 1] = box_a_xywh[:, 1] - box_a_xywh[:, 3] / 2
    a[:, 2] = box_a_xywh[:, 0] + box_a_xywh[:, 2] / 2
    a[:, 3] = box_a_xywh[:, 1] + box_a_xywh[:, 3] / 2
    b[:, 0] = box_b_xywh[:, 0] - box_b_xywh[:, 2] / 2
    b[:, 1] = box_b_xywh[:, 1] - box_b_xywh[:, 3] / 2
    b[:, 2] = box_b_xywh[:, 0] + box_b_xywh[:, 2] / 2
    b[:, 3] = box_b_xywh[:, 1] + box_b_xywh[:, 3] / 2
    max_xy = np.minimum(a[:, None, 2:], b[None, :, 2:])
    min_xy = np.maximum(a[:, None, :2], b[None, :, :2])
    inter = np.clip(max_xy - min_xy, 0.0, None)
    inter = inter[:, :, 0] * inter[:, :, 1]
    area_a = ((a[:, 2] - a[:, 0]) * (a[:, 3] - a[:, 1]))[:, None]
    area_b = ((b[:, 2] - b[:, 0]) * (b[:, 3] - b[:, 1]))[None, :]
    return inter / (area_a + area_b - inter)


class YOLOLossJax:
    def __init__(self, anchors, num_classes, img_size, label_smooth=0.0):
        self.anchors = anchors
        self.num_anchors = len(anchors)
        self.num_classes = num_classes
        self.bbox_attrs = 5 + num_classes
        self.img_size = img_size
        self.feature_length = [img_size[0] // 32, img_size[0] // 16, img_size[0] // 8]
        self.label_smooth = label_smooth
        self.ignore_threshold = 0.5
        self.lambda_conf = 1.0
        self.lambda_cls = 1.0
        self.lambda_loc = 1.0

    # data-dependent GT -> best-anchor assignment: stays as tiny numpy glue
    def _get_target(self, targets, scaled_anchors, in_w, in_h):
        bs = len(targets)
        level = self.feature_length.index(in_w)
        anchor_index = [[0, 1, 2], [3, 4, 5], [6, 7, 8]][level]
        subtract_index = [0, 3, 6][level]
        anchor_shapes = np.concatenate(
            [np.zeros((self.num_anchors, 2), np.float32),
             np.array(scaled_anchors, np.float32)], axis=1)
        out = []
        for b in range(bs):
            recs = {}
            t = np.asarray(targets[b], np.float32).reshape(-1, 5)
            if t.shape[0] == 0:
                out.append(recs)
                continue
            gxs = t[:, 0] * in_w
            gys = t[:, 1] * in_h
            gws = t[:, 2] * in_w
            ghs = t[:, 3] * in_h
            gis = np.floor(gxs).astype(np.int64)
            gjs = np.floor(gys).astype(np.int64)
            gt_box = np.stack([np.zeros_like(gws), np.zeros_like(ghs), gws, ghs], 1)
            anch_ious = _jaccard_np(gt_box, anchor_shapes)
            best_ns = np.argmax(anch_ious, axis=-1)
            for i, best_n in enumerate(best_ns):
                if best_n not in anchor_index:
                    continue
                gi, gj = int(gis[i]), int(gjs[i])
                if gj < in_h and gi < in_w:
                    bn = int(best_n) - subtract_index
                    # TODO(synk): torch's tcls would be multi-hot if two GTs of
                    # different classes hit the same cell; here last class wins.
                    recs[(bn, gj, gi)] = (float(gxs[i]), float(gys[i]),
                                          float(gws[i]), float(ghs[i]),
                                          int(t[i, 4]))
            out.append(recs)
        return out

    def __call__(self, input_nchw, targets):
        bs = int(input_nchw.shape[0])
        in_h = int(input_nchw.shape[2])
        in_w = int(input_nchw.shape[3])
        stride_h = self.img_size[1] / in_h
        stride_w = self.img_size[0] / in_w
        scaled_anchors = [(aw / stride_w, ah / stride_h) for aw, ah in self.anchors]
        level = self.feature_length.index(in_w)
        anchor_index = [[0, 1, 2], [3, 4, 5], [6, 7, 8]][level]
        head_anchors = tuple(
            float(v) for i in anchor_index for v in scaled_anchors[i])

        obj_records = self._get_target(targets, scaled_anchors, in_w, in_h)

        # ---- GT corner boxes for the ignore pass (SMEM scalar prefetch) -----
        tbs = [np.asarray(t, np.float32).reshape(-1, 5) for t in targets]
        n_gts = [tb.shape[0] for tb in tbs]
        max_gt = _round_up(max(max(n_gts), 1), 4)       # bucket to limit recompiles
        gtc = np.zeros((bs, max_gt * 5), np.float32)
        ngt = np.zeros((bs,), np.int32)
        for b, tb in enumerate(tbs):
            n = tb.shape[0]
            ngt[b] = n
            if n == 0:
                continue
            gx = tb[:, 0] * in_w
            gy = tb[:, 1] * in_h
            gw = tb[:, 2] * in_w
            gh = tb[:, 3] * in_h
            gtc[b, 0:5 * n:5] = gx - gw * 0.5
            gtc[b, 1:5 * n:5] = gy - gh * 0.5
            gtc[b, 2:5 * n:5] = gx + gw * 0.5
            gtc[b, 3:5 * n:5] = gy + gh * 0.5
            gtc[b, 4:5 * n:5] = gw * gh

        # ---- sparse object-cell lists (for in-kernel mask + XLA epilogue) ---
        hw = in_h * in_w
        obj_flat = np.full((bs, max_gt), -1, np.int32)
        fb, fa, fs, fc, fbox = [], [], [], [], []
        for b in range(bs):
            for k, ((bn, gj, gi), (gx, gy, gw, gh, c)) in enumerate(
                    obj_records[b].items()):
                obj_flat[b, k] = bn * hw + gj * in_w + gi
                fb.append(b)
                fa.append(bn)
                fs.append(gj * in_w + gi)
                fc.append(c)
                fbox.append((gx, gy, gw, gh))
        n_obj = len(fb)
        max_obj = _round_up(max(n_obj, 1), 8)
        obj_b = np.zeros((max_obj,), np.int32)
        obj_a = np.zeros((max_obj,), np.int32)
        obj_s = np.zeros((max_obj,), np.int32)
        obj_cls = np.zeros((max_obj,), np.int32)
        obj_tbox = np.zeros((max_obj, 4), np.float32)
        obj_valid = np.zeros((max_obj,), np.float32)
        if n_obj:
            obj_b[:n_obj] = fb
            obj_a[:n_obj] = fa
            obj_s[:n_obj] = fs
            obj_cls[:n_obj] = fc
            obj_tbox[:n_obj] = np.asarray(fbox, np.float32)
            obj_valid[:n_obj] = 1.0

        # ---- tile geometry: lane-dense, big tiles, even split for v7x -------
        cells = 3 * in_h * in_w
        rows = -(-cells // 128)
        r8 = _round_up(rows, 8)
        n_tiles = max(1, -(-r8 // 512))          # cap at 512 sublanes / block
        if n_tiles == 1 and r8 >= 128:
            n_tiles = 2                          # give v7x's 2nd TC work at bs=1
        tile_r = _round_up(-(-r8 // n_tiles), 8)
        r_pad = n_tiles * tile_r
        n_outer = 2 if n_tiles % 2 == 0 else 1
        n_inner = n_tiles // n_outer

        fn = _build_loss_fn(self.num_classes, bs, in_h, in_w, tile_r, n_outer,
                            n_inner, r_pad, max_gt, max_obj, head_anchors,
                            float(self.label_smooth),
                            float(self.ignore_threshold),
                            float(self.lambda_conf), float(self.lambda_cls),
                            float(self.lambda_loc))
        return fn(jnp.asarray(input_nchw),
                  jnp.asarray(gtc), jnp.asarray(ngt), jnp.asarray(obj_flat),
                  jnp.asarray(obj_b), jnp.asarray(obj_a), jnp.asarray(obj_s),
                  jnp.asarray(obj_cls), jnp.asarray(obj_tbox),
                  jnp.asarray(obj_valid))


# ----------------------------------------------------------------------------
if __name__ == "__main__":
    key = jax.random.PRNGKey(0)
    anchors = [(32, 32), (64, 64), (96, 64), (96, 128), (128, 96),
               (128, 160), (160, 192), (192, 224), (224, 256)]
    num_classes = 4
    img_size = (256, 256)
    bs = 2
    in_hw = img_size[0] // 32            # stride-32 YOLO head -> 8x8 feature map
    ch = 3 * (5 + num_classes)           # 27

    k1, k2, k3, k4 = jax.random.split(key, 4)
    x = jax.random.normal(k1, (bs, ch, in_hw, in_hw), dtype=jnp.float32) * 0.5

    # targets: list (len=bs) of (N, 5) arrays [cx, cy, w, h, class], normalized
    n_obj = 3
    xy = jax.random.uniform(k2, (bs, n_obj, 2), minval=0.1, maxval=0.9)
    wh = jax.random.uniform(k3, (bs, n_obj, 2), minval=0.1, maxval=0.4)
    cls = jax.random.randint(k4, (bs, n_obj, 1), 0, num_classes).astype(jnp.float32)
    targets = [np.asarray(jnp.concatenate([xy[b], wh[b], cls[b]], axis=-1))
               for b in range(bs)]

    loss_fn = YOLOLossJax(anchors, num_classes, img_size, label_smooth=0.0)
    loss, loss_conf, loss_cls, loss_loc = loss_fn(x, targets)
    jax.block_until_ready((loss, loss_conf, loss_cls, loss_loc))
    assert np.isfinite(float(loss)), "loss is not finite"
    print("KERNEL_OK")
</pallas_src>

<mosaic_0001>
module attributes {stable_mosaic.version = 11 : i64} {
  func.func @_yolo_conf_kernel(%arg0: i32, %arg1: i32, %arg2: i32, %arg3: memref<2x20xf32, #tpu.memory_space<smem>>, %arg4: memref<2xi32, #tpu.memory_space<smem>>, %arg5: memref<2x4xi32, #tpu.memory_space<smem>>, %arg6: memref<5x1x8x128xf32, #tpu.memory_space<vmem>>, %arg7: memref<1x1x8x128xf32, #tpu.memory_space<vmem>>) attributes {dimension_semantics = [#tpu.dimension_semantics<parallel>, #tpu.dimension_semantics<parallel>, #tpu.dimension_semantics<arbitrary>], iteration_bounds = array<i64: 2, 1, 1>, scalar_prefetch = 3 : i64, scratch_operands = 0 : i64, tpu.core_type = #tpu.core_type<tc>, window_params = [{transform_indices = @transform_0, window_bounds = array<i64: 5, 1, 8, 128>}, {transform_indices = @transform_1, window_bounds = array<i64: 1, 1, 8, 128>}]} {
    %c0_i32 = arith.constant 0 : i32
    %0 = arith.cmpi eq, %arg2, %c0_i32 : i32
    %1 = arith.extui %0 : i1 to i32
    %c0_i32_0 = arith.constant 0 : i32
    %2 = arith.cmpi ne, %1, %c0_i32_0 : i32
    scf.if %2 {
      %cst_72 = arith.constant 0.000000e+00 : f32
      %186 = vector.broadcast %cst_72 : f32 to vector<1x1x8x128xf32>
      %c0_73 = arith.constant 0 : index
      %c0_74 = arith.constant 0 : index
      %c0_75 = arith.constant 0 : index
      %c0_76 = arith.constant 0 : index
      %187 = vector.load %arg7[%c0_73, %c0_74, %c0_75, %c0_76] : memref<1x1x8x128xf32, #tpu.memory_space<vmem>>, vector<1x1x8x128xf32>
      tpu.vector_store %arg7[%c0_73, %c0_74, %c0_75, %c0_76], %186 {strides = array<i32>} : memref<1x1x8x128xf32, #tpu.memory_space<vmem>>, vector<1x1x8x128xf32>,
    } else {
    }
    %3 = arith.index_cast %arg0 : i32 to index
    %4 = memref.load %arg4[%3] : memref<2xi32, #tpu.memory_space<smem>>
    %c1_i32 = arith.constant 1 : i32
    %5 = arith.muli %arg1, %c1_i32 : i32
    %6 = arith.addi %5, %arg2 : i32
    %c1024_i32 = arith.constant 1024 : i32
    %7 = arith.muli %6, %c1024_i32 : i32
    %cst = arith.constant 0.000000e+00 : f32
    %8 = vector.broadcast %cst : f32 to vector<8x128xf32>
    %c0_i32_1 = arith.constant 0 : i32
    %c0_i32_2 = arith.constant 0 : i32
    %c1_i32_3 = arith.constant 1 : i32
    %c0_i32_4 = arith.constant 0 : i32
    %c2_i32 = arith.constant 2 : i32
    %c0_i32_5 = arith.constant 0 : i32
    %c3_i32 = arith.constant 3 : i32
    %c0_i32_6 = arith.constant 0 : i32
    %c4_i32 = arith.constant 4 : i32
    %c0_i32_7 = arith.constant 0 : i32
    %c0_i32_8 = arith.constant 0 : i32
    %c8_i32 = arith.constant 8 : i32
    %9 = arith.muli %c0_i32_8, %c8_i32 : i32
    %10 = tpu.assume_multiple %9, 8 : i32
    %11 = tpu.iota {dimensions = array<i32: 0>} : vector<8x128xi32>
    %12 = tpu.iota {dimensions = array<i32: 1>} : vector<8x128xi32>
    %13 = vector.broadcast %10 : i32 to vector<8x128xi32>
    %14 = arith.addi %13, %11 : vector<8x128xi32>
    %c128_i32 = arith.constant 128 : i32
    %15 = vector.broadcast %c128_i32 : i32 to vector<8x128xi32>
    %16 = arith.muli %14, %15 : vector<8x128xi32>
    %17 = vector.broadcast %7 : i32 to vector<8x128xi32>
    %18 = arith.addi %17, %16 : vector<8x128xi32>
    %19 = arith.addi %18, %12 : vector<8x128xi32>
    %c192_i32 = arith.constant 192 : i32
    %20 = vector.broadcast %c192_i32 : i32 to vector<8x128xi32>
    %21 = arith.cmpi slt, %19, %20 : vector<8x128xi32>
    %22 = arith.extui %21 : vector<8x128xi1> to vector<8x128xi32>
    %23 = arith.sitofp %22 : vector<8x128xi32> to vector<8x128xf32>
    %24 = arith.sitofp %19 : vector<8x128xi32> to vector<8x128xf32>
    %cst_9 = arith.constant 5.000000e-01 : f32
    %25 = vector.broadcast %cst_9 : f32 to vector<8x128xf32>
    %26 = arith.addf %24, %25 : vector<8x128xf32>
    %cst_10 = arith.constant 1.562500e-02 : f32
    %27 = vector.broadcast %cst_10 : f32 to vector<8x128xf32>
    %28 = arith.mulf %26, %27 : vector<8x128xf32>
    %29 = math.floor %28 : vector<8x128xf32>
    %cst_11 = arith.constant 6.400000e+01 : f32
    %30 = vector.broadcast %cst_11 : f32 to vector<8x128xf32>
    %31 = arith.mulf %29, %30 : vector<8x128xf32>
    %32 = arith.subf %24, %31 : vector<8x128xf32>
    %cst_12 = arith.constant 5.000000e-01 : f32
    %33 = vector.broadcast %cst_12 : f32 to vector<8x128xf32>
    %34 = arith.addf %32, %33 : vector<8x128xf32>
    %cst_13 = arith.constant 1.250000e-01 : f32
    %35 = vector.broadcast %cst_13 : f32 to vector<8x128xf32>
    %36 = arith.mulf %34, %35 : vector<8x128xf32>
    %37 = math.floor %36 : vector<8x128xf32>
    %cst_14 = arith.constant 8.000000e+00 : f32
    %38 = vector.broadcast %cst_14 : f32 to vector<8x128xf32>
    %39 = arith.mulf %37, %38 : vector<8x128xf32>
    %40 = arith.subf %32, %39 : vector<8x128xf32>
    %cst_15 = arith.constant 5.000000e-01 : f32
    %41 = vector.broadcast %cst_15 : f32 to vector<8x128xf32>
    %42 = arith.cmpf olt, %29, %41 : vector<8x128xf32>
    %cst_16 = arith.constant 1.500000e+00 : f32
    %43 = vector.broadcast %cst_16 : f32 to vector<8x128xf32>
    %44 = arith.cmpf olt, %29, %43 : vector<8x128xf32>
    %cst_17 = arith.constant 2.000000e+00 : f32
    %cst_18 = arith.constant 3.000000e+00 : f32
    %45 = vector.broadcast %cst_17 : f32 to vector<8x128xf32>
    %46 = vector.broadcast %cst_18 : f32 to vector<8x128xf32>
    %47 = arith.select %44, %45, %46 : vector<8x128xi1>, vector<8x128xf32>
    %cst_19 = arith.constant 1.000000e+00 : f32
    %48 = vector.broadcast %cst_19 : f32 to vector<8x128xf32>
    %49 = arith.select %42, %48, %47 : vector<8x128xi1>, vector<8x128xf32>
    %cst_20 = arith.constant 5.000000e-01 : f32
    %50 = vector.broadcast %cst_20 : f32 to vector<8x128xf32>
    %51 = arith.cmpf olt, %29, %50 : vector<8x128xf32>
    %cst_21 = arith.constant 1.500000e+00 : f32
    %52 = vector.broadcast %cst_21 : f32 to vector<8x128xf32>
    %53 = arith.cmpf olt, %29, %52 : vector<8x128xf32>
    %cst_22 = arith.constant 2.000000e+00 : f32
    %cst_23 = arith.constant 2.000000e+00 : f32
    %54 = vector.broadcast %cst_22 : f32 to vector<8x128xf32>
    %55 = vector.broadcast %cst_23 : f32 to vector<8x128xf32>
    %56 = arith.select %53, %54, %55 : vector<8x128xi1>, vector<8x128xf32>
    %cst_24 = arith.constant 1.000000e+00 : f32
    %57 = vector.broadcast %cst_24 : f32 to vector<8x128xf32>
    %58 = arith.select %51, %57, %56 : vector<8x128xi1>, vector<8x128xf32>
    %c0_i32_25 = arith.constant 0 : i32
    %c0_i32_26 = arith.constant 0 : i32
    %59 = tpu.memref_slice %arg6[%c0_i32_1, %c0_i32_2, %c0_i32_25, %c0_i32_26] : memref<5x1x8x128xf32, #tpu.memory_space<vmem>> -> memref<1x1x8x128xf32, #tpu.memory_space<vmem>>
    %60 = tpu.memref_squeeze %59 : memref<1x1x8x128xf32, #tpu.memory_space<vmem>> -> memref<8x128xf32, #tpu.memory_space<vmem>>
    %61 = arith.index_cast %10 : i32 to index
    %c0 = arith.constant 0 : index
    %62 = vector.load %60[%61, %c0] : memref<8x128xf32, #tpu.memory_space<vmem>>, vector<8x128xf32>
    %63 = arith.negf %62 : vector<8x128xf32>
    %64 = math.exp %63 : vector<8x128xf32>
    %cst_27 = arith.constant 1.000000e+00 : f32
    %65 = vector.broadcast %cst_27 : f32 to vector<8x128xf32>
    %66 = arith.addf %65, %64 : vector<8x128xf32>
    %67 = arith.divf %65, %66 : vector<8x128xf32>
    %68 = arith.addf %67, %40 : vector<8x128xf32>
    %c0_i32_28 = arith.constant 0 : i32
    %c0_i32_29 = arith.constant 0 : i32
    %69 = tpu.memref_slice %arg6[%c1_i32_3, %c0_i32_4, %c0_i32_28, %c0_i32_29] : memref<5x1x8x128xf32, #tpu.memory_space<vmem>> -> memref<1x1x8x128xf32, #tpu.memory_space<vmem>>
    %70 = tpu.memref_squeeze %69 : memref<1x1x8x128xf32, #tpu.memory_space<vmem>> -> memref<8x128xf32, #tpu.memory_space<vmem>>
    %71 = arith.index_cast %10 : i32 to index
    %c0_30 = arith.constant 0 : index
    %72 = vector.load %70[%71, %c0_30] : memref<8x128xf32, #tpu.memory_space<vmem>>, vector<8x128xf32>
    %73 = arith.negf %72 : vector<8x128xf32>
    %74 = math.exp %73 : vector<8x128xf32>
    %cst_31 = arith.constant 1.000000e+00 : f32
    %75 = vector.broadcast %cst_31 : f32 to vector<8x128xf32>
    %76 = arith.addf %75, %74 : vector<8x128xf32>
    %77 = arith.divf %75, %76 : vector<8x128xf32>
    %78 = arith.addf %77, %37 : vector<8x128xf32>
    %c0_i32_32 = arith.constant 0 : i32
    %c0_i32_33 = arith.constant 0 : i32
    %79 = tpu.memref_slice %arg6[%c2_i32, %c0_i32_5, %c0_i32_32, %c0_i32_33] : memref<5x1x8x128xf32, #tpu.memory_space<vmem>> -> memref<1x1x8x128xf32, #tpu.memory_space<vmem>>
    %80 = tpu.memref_squeeze %79 : memref<1x1x8x128xf32, #tpu.memory_space<vmem>> -> memref<8x128xf32, #tpu.memory_space<vmem>>
    %81 = arith.index_cast %10 : i32 to index
    %c0_34 = arith.constant 0 : index
    %82 = vector.load %80[%81, %c0_34] : memref<8x128xf32, #tpu.memory_space<vmem>>, vector<8x128xf32>
    %83 = math.exp %82 : vector<8x128xf32>
    %84 = arith.mulf %83, %49 : vector<8x128xf32>
    %c0_i32_35 = arith.constant 0 : i32
    %c0_i32_36 = arith.constant 0 : i32
    %85 = tpu.memref_slice %arg6[%c3_i32, %c0_i32_6, %c0_i32_35, %c0_i32_36] : memref<5x1x8x128xf32, #tpu.memory_space<vmem>> -> memref<1x1x8x128xf32, #tpu.memory_space<vmem>>
    %86 = tpu.memref_squeeze %85 : memref<1x1x8x128xf32, #tpu.memory_space<vmem>> -> memref<8x128xf32, #tpu.memory_space<vmem>>
    %87 = arith.index_cast %10 : i32 to index
    %c0_37 = arith.constant 0 : index
    %88 = vector.load %86[%87, %c0_37] : memref<8x128xf32, #tpu.memory_space<vmem>>, vector<8x128xf32>
    %89 = math.exp %88 : vector<8x128xf32>
    %90 = arith.mulf %89, %58 : vector<8x128xf32>
    %cst_38 = arith.constant 5.000000e-01 : f32
    %91 = vector.broadcast %cst_38 : f32 to vector<8x128xf32>
    %92 = arith.mulf %84, %91 : vector<8x128xf32>
    %93 = arith.subf %68, %92 : vector<8x128xf32>
    %cst_39 = arith.constant 5.000000e-01 : f32
    %94 = vector.broadcast %cst_39 : f32 to vector<8x128xf32>
    %95 = arith.mulf %84, %94 : vector<8x128xf32>
    %96 = arith.addf %68, %95 : vector<8x128xf32>
    %cst_40 = arith.constant 5.000000e-01 : f32
    %97 = vector.broadcast %cst_40 : f32 to vector<8x128xf32>
    %98 = arith.mulf %90, %97 : vector<8x128xf32>
    %99 = arith.subf %78, %98 : vector<8x128xf32>
    %cst_41 = arith.constant 5.000000e-01 : f32
    %100 = vector.broadcast %cst_41 : f32 to vector<8x128xf32>
    %101 = arith.mulf %90, %100 : vector<8x128xf32>
    %102 = arith.addf %78, %101 : vector<8x128xf32>
    %103 = arith.mulf %84, %90 : vector<8x128xf32>
    %cst_42 = arith.constant 0.000000e+00 : f32
    %104 = vector.broadcast %cst_42 : f32 to vector<8x128xf32>
    %c0_i32_43 = arith.constant 0 : i32
    %105 = arith.subi %4, %c0_i32_43 : i32
    %106 = arith.addi %c0_i32_43, %105 : i32
    %c1_i32_44 = arith.constant 1 : i32
    %107 = scf.for %arg8 = %c0_i32_43 to %106 step %c1_i32_44 iter_args(%arg9 = %104) -> (vector<8x128xf32>)  : i32 {
      %c5_i32 = arith.constant 5 : i32
      %186 = arith.muli %c5_i32, %arg8 : i32
      %c0_i32_72 = arith.constant 0 : i32
      %187 = arith.addi %186, %c0_i32_72 : i32
      %188 = arith.index_cast %arg0 : i32 to index
      %189 = arith.index_cast %187 : i32 to index
      %190 = memref.load %arg3[%188, %189] : memref<2x20xf32, #tpu.memory_space<smem>>
      %c5_i32_73 = arith.constant 5 : i32
      %191 = arith.muli %c5_i32_73, %arg8 : i32
      %c1_i32_74 = arith.constant 1 : i32
      %192 = arith.addi %191, %c1_i32_74 : i32
      %193 = arith.index_cast %arg0 : i32 to index
      %194 = arith.index_cast %192 : i32 to index
      %195 = memref.load %arg3[%193, %194] : memref<2x20xf32, #tpu.memory_space<smem>>
      %c5_i32_75 = arith.constant 5 : i32
      %196 = arith.muli %c5_i32_75, %arg8 : i32
      %c2_i32_76 = arith.constant 2 : i32
      %197 = arith.addi %196, %c2_i32_76 : i32
      %198 = arith.index_cast %arg0 : i32 to index
      %199 = arith.index_cast %197 : i32 to index
      %200 = memref.load %arg3[%198, %199] : memref<2x20xf32, #tpu.memory_space<smem>>
      %c5_i32_77 = arith.constant 5 : i32
      %201 = arith.muli %c5_i32_77, %arg8 : i32
      %c3_i32_78 = arith.constant 3 : i32
      %202 = arith.addi %201, %c3_i32_78 : i32
      %203 = arith.index_cast %arg0 : i32 to index
      %204 = arith.index_cast %202 : i32 to index
      %205 = memref.load %arg3[%203, %204] : memref<2x20xf32, #tpu.memory_space<smem>>
      %c5_i32_79 = arith.constant 5 : i32
      %206 = arith.muli %c5_i32_79, %arg8 : i32
      %c4_i32_80 = arith.constant 4 : i32
      %207 = arith.addi %206, %c4_i32_80 : i32
      %208 = arith.index_cast %arg0 : i32 to index
      %209 = arith.index_cast %207 : i32 to index
      %210 = memref.load %arg3[%208, %209] : memref<2x20xf32, #tpu.memory_space<smem>>
      %211 = vector.broadcast %200 : f32 to vector<8x128xf32>
      %212 = arith.minimumf %211, %96 : vector<8x128xf32>
      %213 = vector.broadcast %190 : f32 to vector<8x128xf32>
      %214 = arith.maximumf %213, %93 : vector<8x128xf32>
      %215 = arith.subf %212, %214 : vector<8x128xf32>
      %cst_81 = arith.constant 0.000000e+00 : f32
      %216 = vector.broadcast %cst_81 : f32 to vector<8x128xf32>
      %217 = arith.maximumf %215, %216 : vector<8x128xf32>
      %218 = vector.broadcast %205 : f32 to vector<8x128xf32>
      %219 = arith.minimumf %218, %102 : vector<8x128xf32>
      %220 = vector.broadcast %195 : f32 to vector<8x128xf32>
      %221 = arith.maximumf %220, %99 : vector<8x128xf32>
      %222 = arith.subf %219, %221 : vector<8x128xf32>
      %cst_82 = arith.constant 0.000000e+00 : f32
      %223 = vector.broadcast %cst_82 : f32 to vector<8x128xf32>
      %224 = arith.maximumf %222, %223 : vector<8x128xf32>
      %225 = arith.mulf %217, %224 : vector<8x128xf32>
      %226 = vector.broadcast %210 : f32 to vector<8x128xf32>
      %227 = arith.addf %226, %103 : vector<8x128xf32>
      %228 = arith.subf %227, %225 : vector<8x128xf32>
      %cst_83 = arith.constant 5.000000e-01 : f32
      %229 = vector.broadcast %cst_83 : f32 to vector<8x128xf32>
      %230 = arith.mulf %229, %228 : vector<8x128xf32>
      %231 = arith.cmpf ogt, %225, %230 : vector<8x128xf32>
      %232 = arith.extui %231 : vector<8x128xi1> to vector<8x128xi32>
      %233 = arith.sitofp %232 : vector<8x128xi32> to vector<8x128xf32>
      %234 = arith.maximumf %arg9, %233 : vector<8x128xf32>
      scf.yield %234 : vector<8x128xf32>
    }
    %cst_45 = arith.constant 0.000000e+00 : f32
    %108 = vector.broadcast %cst_45 : f32 to vector<8x128xf32>
    %109 = arith.index_cast %arg0 : i32 to index
    %c0_46 = arith.constant 0 : index
    %110 = memref.load %arg5[%109, %c0_46] : memref<2x4xi32, #tpu.memory_space<smem>>
    %111 = vector.broadcast %110 : i32 to vector<8x128xi32>
    %112 = arith.cmpi eq, %19, %111 : vector<8x128xi32>
    %113 = arith.extui %112 : vector<8x128xi1> to vector<8x128xi32>
    %114 = arith.sitofp %113 : vector<8x128xi32> to vector<8x128xf32>
    %115 = arith.maximumf %108, %114 : vector<8x128xf32>
    %116 = arith.index_cast %arg0 : i32 to index
    %c1 = arith.constant 1 : index
    %117 = memref.load %arg5[%116, %c1] : memref<2x4xi32, #tpu.memory_space<smem>>
    %118 = vector.broadcast %117 : i32 to vector<8x128xi32>
    %119 = arith.cmpi eq, %19, %118 : vector<8x128xi32>
    %120 = arith.extui %119 : vector<8x128xi1> to vector<8x128xi32>
    %121 = arith.sitofp %120 : vector<8x128xi32> to vector<8x128xf32>
    %122 = arith.maximumf %115, %121 : vector<8x128xf32>
    %123 = arith.index_cast %arg0 : i32 to index
    %c2 = arith.constant 2 : index
    %124 = memref.load %arg5[%123, %c2] : memref<2x4xi32, #tpu.memory_space<smem>>
    %125 = vector.broadcast %124 : i32 to vector<8x128xi32>
    %126 = arith.cmpi eq, %19, %125 : vector<8x128xi32>
    %127 = arith.extui %126 : vector<8x128xi1> to vector<8x128xi32>
    %128 = arith.sitofp %127 : vector<8x128xi32> to vector<8x128xf32>
    %129 = arith.maximumf %122, %128 : vector<8x128xf32>
    %130 = arith.index_cast %arg0 : i32 to index
    %c3 = arith.constant 3 : index
    %131 = memref.load %arg5[%130, %c3] : memref<2x4xi32, #tpu.memory_space<smem>>
    %132 = vector.broadcast %131 : i32 to vector<8x128xi32>
    %133 = arith.cmpi eq, %19, %132 : vector<8x128xi32>
    %134 = arith.extui %133 : vector<8x128xi1> to vector<8x128xi32>
    %135 = arith.sitofp %134 : vector<8x128xi32> to vector<8x128xf32>
    %136 = arith.maximumf %129, %135 : vector<8x128xf32>
    %cst_47 = arith.constant 1.000000e+00 : f32
    %137 = vector.broadcast %cst_47 : f32 to vector<8x128xf32>
    %138 = arith.subf %137, %136 : vector<8x128xf32>
    %139 = arith.mulf %23, %138 : vector<8x128xf32>
    %cst_48 = arith.constant 1.000000e+00 : f32
    %140 = vector.broadcast %cst_48 : f32 to vector<8x128xf32>
    %141 = arith.subf %140, %107 : vector<8x128xf32>
    %142 = arith.mulf %139, %141 : vector<8x128xf32>
    %c0_i32_49 = arith.constant 0 : i32
    %c0_i32_50 = arith.constant 0 : i32
    %143 = tpu.memref_slice %arg6[%c4_i32, %c0_i32_7, %c0_i32_49, %c0_i32_50] : memref<5x1x8x128xf32, #tpu.memory_space<vmem>> -> memref<1x1x8x128xf32, #tpu.memory_space<vmem>>
    %144 = tpu.memref_squeeze %143 : memref<1x1x8x128xf32, #tpu.memory_space<vmem>> -> memref<8x128xf32, #tpu.memory_space<vmem>>
    %145 = arith.index_cast %10 : i32 to index
    %c0_51 = arith.constant 0 : index
    %146 = vector.load %144[%145, %c0_51] : memref<8x128xf32, #tpu.memory_space<vmem>>, vector<8x128xf32>
    %147 = math.absf %146 : vector<8x128xf32>
    %cst_52 = arith.constant 0.000000e+00 : f32
    %148 = vector.broadcast %cst_52 : f32 to vector<8x128xf32>
    %149 = arith.subf %148, %147 : vector<8x128xf32>
    %150 = math.exp %149 : vector<8x128xf32>
    %cst_53 = arith.constant 1.000000e+00 : f32
    %151 = vector.broadcast %cst_53 : f32 to vector<8x128xf32>
    %152 = arith.addf %151, %150 : vector<8x128xf32>
    %153 = math.log %152 : vector<8x128xf32>
    %cst_54 = arith.constant 0.000000e+00 : f32
    %154 = vector.broadcast %cst_54 : f32 to vector<8x128xf32>
    %155 = arith.minimumf %146, %154 : vector<8x128xf32>
    %156 = arith.subf %155, %153 : vector<8x128xf32>
    %cst_55 = arith.constant 0.000000e+00 : f32
    %157 = vector.broadcast %cst_55 : f32 to vector<8x128xf32>
    %158 = arith.maximumf %146, %157 : vector<8x128xf32>
    %cst_56 = arith.constant 0.000000e+00 : f32
    %159 = vector.broadcast %cst_56 : f32 to vector<8x128xf32>
    %160 = arith.subf %159, %158 : vector<8x128xf32>
    %161 = arith.subf %160, %153 : vector<8x128xf32>
    %cst_57 = arith.constant -16.1180954 : f32
    %cst_58 = arith.constant -1.00000008E-7 : f32
    %162 = vector.broadcast %cst_57 : f32 to vector<8x128xf32>
    %163 = arith.maximumf %162, %156 : vector<8x128xf32>
    %164 = vector.broadcast %cst_58 : f32 to vector<8x128xf32>
    %165 = arith.minimumf %164, %163 : vector<8x128xf32>
    %cst_59 = arith.constant -16.1180954 : f32
    %cst_60 = arith.constant -1.00000008E-7 : f32
    %166 = vector.broadcast %cst_59 : f32 to vector<8x128xf32>
    %167 = arith.maximumf %166, %161 : vector<8x128xf32>
    %168 = vector.broadcast %cst_60 : f32 to vector<8x128xf32>
    %169 = arith.minimumf %168, %167 : vector<8x128xf32>
    %170 = arith.mulf %136, %165 : vector<8x128xf32>
    %cst_61 = arith.constant 1.000000e+00 : f32
    %171 = vector.broadcast %cst_61 : f32 to vector<8x128xf32>
    %172 = arith.subf %171, %136 : vector<8x128xf32>
    %173 = arith.mulf %172, %169 : vector<8x128xf32>
    %174 = arith.addf %170, %173 : vector<8x128xf32>
    %cst_62 = arith.constant 0.000000e+00 : f32
    %175 = vector.broadcast %cst_62 : f32 to vector<8x128xf32>
    %176 = arith.subf %175, %174 : vector<8x128xf32>
    %177 = arith.addf %136, %142 : vector<8x128xf32>
    %178 = arith.mulf %176, %177 : vector<8x128xf32>
    %179 = arith.addf %8, %178 : vector<8x128xf32>
    %c1_i32_63 = arith.constant 1 : i32
    %c0_64 = arith.constant 0 : index
    %c0_65 = arith.constant 0 : index
    %c0_66 = arith.constant 0 : index
    %c0_67 = arith.constant 0 : index
    %180 = vector.load %arg7[%c0_64, %c0_65, %c0_66, %c0_67] : memref<1x1x8x128xf32, #tpu.memory_space<vmem>>, vector<1x1x8x128xf32>
    %181 = vector.shape_cast %180 : vector<1x1x8x128xf32> to vector<8x128xf32>
    %182 = arith.addf %181, %179 : vector<8x128xf32>
    %c0_68 = arith.constant 0 : index
    %c0_69 = arith.constant 0 : index
    %c0_70 = arith.constant 0 : index
    %c0_71 = arith.constant 0 : index
    %183 = vector.load %arg7[%c0_68, %c0_69, %c0_70, %c0_71] : memref<1x1x8x128xf32, #tpu.memory_space<vmem>>, vector<1x1x8x128xf32>
    %184 = vector.shape_cast %183 : vector<1x1x8x128xf32> to vector<8x128xf32>
    %185 = vector.shape_cast %182 : vector<8x128xf32> to vector<1x1x8x128xf32>
    tpu.vector_store %arg7[%c0_68, %c0_69, %c0_70, %c0_71], %185 {strides = array<i32>} : memref<1x1x8x128xf32, #tpu.memory_space<vmem>>, vector<1x1x8x128xf32>,
    return
  }
  func.func @transform_0(%arg0: i32, %arg1: i32, %arg2: i32, %arg3: memref<2x20xf32, #tpu.memory_space<smem>>, %arg4: memref<2xi32, #tpu.memory_space<smem>>, %arg5: memref<2x4xi32, #tpu.memory_space<smem>>) -> (i32, i32, i32, i32) {
    %c1_i32 = arith.constant 1 : i32
    %0 = arith.muli %arg1, %c1_i32 : i32
    %1 = arith.addi %0, %arg2 : i32
    %c0_i32 = arith.constant 0 : i32
    %c0_i32_0 = arith.constant 0 : i32
    %c0_i32_1 = arith.constant 0 : i32
    return %c0_i32, %arg0, %1, %c0_i32_0 : i32, i32, i32, i32
  }
  func.func @transform_1(%arg0: i32, %arg1: i32, %arg2: i32, %arg3: memref<2x20xf32, #tpu.memory_space<smem>>, %arg4: memref<2xi32, #tpu.memory_space<smem>>, %arg5: memref<2x4xi32, #tpu.memory_space<smem>>) -> (i32, i32, i32, i32) {
    %c0_i32 = arith.constant 0 : i32
    %c0_i32_0 = arith.constant 0 : i32
    %c0_i32_1 = arith.constant 0 : i32
    return %arg0, %arg1, %c0_i32, %c0_i32_0 : i32, i32, i32, i32
  }
}

</mosaic_0001>

<bundles_post_ra>
// kernel: fn.1
= control target key start
LH: loop header
LB: loop body
LE: loop exit
PB: predicated region body
PF: predicated region fallthrough
CT: control target
= control target key end

     0   :  { %s934_s0 = inlined_call_operand.vmem [shape: f32[2,20], index: 0, kind: input, shape index: {}]   ;;  %s935_s3 = inlined_call_operand.vmem [shape: f32[5,2,8,128], index: 3, kind: input, shape index: {}]   ;;  %s936_s4 = inlined_call_operand.vmem [shape: f32[2,1,8,128], index: 4, kind: output, shape index: {}]   ;;  %s937_s1 = inlined_call_operand.vmem [shape: s32[2], index: 1, kind: input, shape index: {}]   ;;  %s938_s2 = inlined_call_operand.vmem [shape: s32[2,4], index: 2, kind: input, shape index: {}]  }
   0x1   :  { %941 = sst [smem:[#allocation10_spill]] %s935_s3  ;;  %s9_s17 = sshll.u32 %s934_s0, 4  ;;  %s10_s17 = int_to_ptr.vmem [resolvable:$true] %s9_s17 }
   0x2   :  { %942 = sst [smem:[#allocation11_spill]] %s936_s4  ;;  %s13_s20 = sshll.u32 %s937_s1, 4  ;;  %s14_s20 = int_to_ptr.vmem [resolvable:$true] %s13_s20 }
   0x3   :  { %s627_s21 = scalar_lea.vmem %s10_s17, 32  ;;  %p632_p1 = scmp.lt.s32.totalorder %s10_s17, %s10_s17 }
   0x4   :  { %p628_p0 = scmp.ne.s32.totalorder %s10_s17, %s627_s21  ;;  %p633_p2 = scmp.lt.s32.totalorder %s627_s21, %s627_s21 }
   0x6   :  { %p634_p3 = por %p633_p2, %p632_p1 }
   0x8   :  { %p635_p4 = pnand %p634_p3, %p628_p0 }
   0xa   :  { %638 = shalt.err (!%p635_p4)  }
   0xb   :  { %s729_s22 = smov [#allocation3]   ;;  %s639_s23 = scalar_lea.vmem %s14_s20, 16 }
   0xc   :  { %12 = dma.vmem_to_smem %s10_s17, 32, %s729_s22, [#allocation2] }
   0xd   :  { %p640_p5 = scmp.ne.s32.totalorder %s14_s20, %s639_s23  ;;  %p644_p6 = scmp.lt.s32.totalorder %s14_s20, %s14_s20 }
   0xe   :  { %p645_p7 = scmp.lt.s32.totalorder %s639_s23, %s639_s23 }
  0x10   :  { %p646_p8 = por %p645_p7, %p644_p6 }
  0x12   :  { %p647_p9 = pnand %p646_p8, %p640_p5 }
  0x14   :  { %650 = shalt.err (!%p647_p9)  }
  0x15   :  { %s730_s0 = smov [#allocation4]   ;;  %s17_s25 = sshll.u32 %s938_s2, 4  ;;  %s18_s25 = int_to_ptr.vmem [resolvable:$true] %s17_s25 }
  0x16   :  { %16 = dma.vmem_to_smem %s14_s20, 16, %s730_s0, [#allocation2] }
  0x17   :  { %s651_s26 = scalar_lea.vmem %s18_s25, 32  ;;  %p656_p11 = scmp.lt.s32.totalorder %s18_s25, %s18_s25 }
  0x18   :  { %p652_p10 = scmp.ne.s32.totalorder %s18_s25, %s651_s26  ;;  %p657_p12 = scmp.lt.s32.totalorder %s651_s26, %s651_s26 }
  0x1a   :  { %p658_p13 = por %p657_p12, %p656_p11 }
  0x1c   :  { %p659_p0 = pnand %p658_p13, %p652_p10 }
  0x1e   :  { %662 = shalt.err (!%p659_p0)  }
  0x1f   :  { %s731_s27 = smov [#allocation5]  }
  0x20   :  { %20 = dma.vmem_to_smem %s18_s25, 32, %s731_s27, [#allocation2] }
  0x21   :  { %695 = dma.done.wait [#allocation2], 80 }
  0x22   :  { %696 = vsyncadd [#allocation2], 4294967216 }
  0x23   :  { %22 = sfence }
  0x24   :  { %s770_s28 = smov 0   ;;  %s772_s29 = smov 0  }
  0x25   :  { %s774_s30 = smov 0   ;;  %s776_s2 = smov 0  }
  0x26   :  { %s778_s5 = smov 0  }
  0x27 LB: > { %943 = sst [smem:[#allocation8_spill]] %s711_s2  ;;  %s47_s6 = sadd.s32 1, %s711_s2  ;;  %s715_s5 = sphi %s778_s5, %s28_s5   ;;  %s711_s2 = sphi %s776_s2, %s950_s2   ;;  %s707_s30 = sphi %s774_s30, %s949_s30   ;;  %s703_s29 = sphi %s772_s29, %s952_s29   ;;  %s699_s28 = sphi %s770_s28, %s951_s28  }
  0x28   : > { %p49_p1 = scmp.ge.s32.totalorder %s47_s6, 2  ;;  %p65_p2 = scmp.ne.s32.totalorder %s703_s29, %s699_s28 }
  0x29   : > { %p66_p3 = scmp.eq.s32.totalorder %s715_s5, 0  ;;  %s58_s8 = sadd.s32 1, %s703_s29 }
  0x2a   : > { %s954_s6 = smov (%p49_p1, %s47_s6), 0  ;;  %p513_p6 = scmp.ge.s32.totalorder %s715_s5, 2 }
  0x2b   : > { %944 = sst [smem:[#allocation9_spill]] %s954_s6  ;;  %p67_p4 = por %p66_p3, %p65_p2 }
  0x2c   : > { %s53_s7 = ssub.s32 %s711_s2, %s954_s6  ;;  %119 = sbr.rel (%p513_p6) target bundleno = 64 (0x40), region = 16 }
  0x2d   : > { %p56_p5 = scmp.eq.s32.totalorder %s53_s7, 0 }
  0x2f   : > { %s805_s9 = scalar_select %p56_p5, %s703_s29, %s58_s8  }
  0x33   : > { %122 = sbr.rel (!%p67_p4) target bundleno = 64 (0x40), region = 20  ;;  %s124_s10 = sand.u32 (%p67_p4), 1, %s703_s29  }
  0x34   : > { %s514_s11 = sshll.u32 (%p67_p4), %s711_s2, 3  ;;  %s538_s12 = smul.u32 (%p67_p4), 40, %s124_s10 }
  0x35   : > { %s945_s3 = sld [smem:[#allocation10_spill]] (%p67_p4) }
  0x36   : > { %s126_s16 = scalar_lea.vmem (%p67_p4), [#allocation6], %s538_s12 }
  0x3b   : > { %s130_s15 = scalar_lea.vmem %s945_s3, %s514_s11 }
  0x3c   : > { %v166_v0 = vld [vmem:[%s130_s15] sm:$0xff]  ;;  %v168_v1 = vld [vmem:[%s130_s15 + $0x10] sm:$0xff] }
  0x3d   : > { %v170_v2 = vld [vmem:[%s130_s15 + $0x20] sm:$0xff]  ;;  %v172_v3 = vld [vmem:[%s130_s15 + $0x30] sm:$0xff]  ;;  %167 = vst [vmem:[%s126_s16] sm:$0xff] %v166_v0  ;;  %169 = vst [vmem:[%s126_s16 + $0x8] sm:$0xff] %v168_v1 }
  0x3e   : > { %v174_v4 = vld [vmem:[%s130_s15 + $0x40] sm:$0xff]  ;;  %171 = vst [vmem:[%s126_s16 + $0x10] sm:$0xff] %v170_v2  ;;  %173 = vst [vmem:[%s126_s16 + $0x18] sm:$0xff] %v172_v3 }
  0x3f   : > { %175 = vst [vmem:[%s126_s16 + $0x20] sm:$0xff] %v174_v4 }
  0x40 PF: > { %p515_p7 = scmp.ge.s32.totalorder %s715_s5, 1  ;;  %p180_p8 = scmp.lt.s32.totalorder %s715_s5, 3 }
  0x42   : > { %p181_p9 = pnand %p515_p7, %p180_p8 }
  0x43   : > { %s187_s17 = sand.u32 (!%p181_p9), 1, %s699_s28   ;;  %p209_p10 = scmp.lt.s32.totalorder (!%p181_p9), %s707_s30, 1  ;;  %v224_v5 = vlaneseq (!%p181_p9)  ;;  %v732_v15 = vmov (!%p181_p9), 0.0   ;;  %v733_v26 = vmov (!%p181_p9), 3.0   ;;  %v734_v31 = vmov (!%p181_p9), 2.0  }
  0x44   : > { %184 = sbr.rel (%p181_p9) target bundleno = 193 (0xc1), region = 58  ;;  %s818_s19 = sld [smem:[#allocation4 + %s707_s30]] (!%p181_p9)  ;;  %v864_v55 = vmov (!%p181_p9), 0.0  }
  0x45   : > { %s539_s18 = smul.u32 (!%p181_p9), 40, %s187_s17  ;;  %v225_v6 = vshrl.u32 (!%p181_p9), %v224_v5, 7  ;;  %v227_v7 = vand.u32 (!%p181_p9), 127, %v224_v5  ;;  %s946_s4 = sld [smem:[#allocation11_spill]] (!%p181_p9) }
  0x47   : > { %v230_v8 = vmul.u32 (!%p181_p9), 128, %v225_v6  ;;  %s821_s22 = scalar_lea.vmem (!%p181_p9), [#allocation6], %s539_s18 }
  0x48   : > { %v253_v9 = vld [vmem:[%s821_s22] sm:$0xff] (!%p181_p9)  ;;  %v519_v10 = vld [vmem:[%s821_s22 + $0x8] sm:$0xff] (!%p181_p9)  ;;  %v521_v11 = vld [vmem:[%s821_s22 + $0x10] sm:$0xff] (!%p181_p9) }
  0x49   : > { %v518_v12 = vmul.f32 (!%p181_p9), -1.442695, %v253_v9  ;;  %v520_v13 = vmul.f32 (!%p181_p9), -1.442695, %v519_v10  ;;  %v272_v14 = vmul.f32 (!%p181_p9), 1.442695, %v521_v11  ;;  %v833_v16 = vadd.s32 (!%p181_p9), %v230_v8, %v227_v7 }
  0x4a   : > { %v522_v17 = vld [vmem:[%s821_s22 + $0x18] sm:$0xff] (!%p181_p9)  ;;  %p523_p11 = scmp.le.s32.totalorder (!%p181_p9), %s818_s19, 0 }
  0x4b   : > { %s210_s20 = scalar_select %p209_p10, %s707_s30, 1  ;;  %611 = vpow2.f32 %v518_v12  ;;  %v277_v18 = vmul.f32 1.442695, %v522_v17  ;;  %vm234_vm0 = vcmp.lt.s32.totalorder %v833_v16, 192  ;;  %v237_v19 = vcvt.s32.f32 %v833_v16 }
  0x4c   : > { %613 = vpow2.f32 %v520_v13  ;;  %v839_v20 = vsel %vm234_vm0, 1.0, %v732_v15  ;;  %v866_v56 = vmov (!%p523_p11), 0.0   ;;  %s868_s24 = smov (!%p523_p11), 0  }
  0x4d   : > { %s516_s21 = sshll.u32 %s210_s20, 3  ;;  %615 = vpow2.f32 %v272_v14  ;;  %v238_v21 = vadd.f32 0.5, %v237_v19 }
  0x4e   : > { %s829_s1 = scalar_lea.vmem %s946_s4, %s516_s21  ;;  %617 = vpow2.f32 %v277_v18 }
  0x4f   : > { %220 = vst [vmem:[%s829_s1] sm:$0xff] %v732_v15  ;;  %v239_v22 = vmul.f32 0.015625, %v238_v21 }
  0x51   : > { %v240_v23 = vfloor.f32 %v239_v22 }
  0x53   : > { %v241_v24 = vmul.f32 64.0, %v240_v23  ;;  %vm248_vm1 = vcmp.lt.f32.partialorder %v240_v23, 0.5  ;;  %vm249_vm2 = vcmp.lt.f32.partialorder %v240_v23, 1.5 }
  0x54   : > { %v250_v27 = vsel %vm249_vm2, 2.0, %v733_v26  ;;  %v252_v32 = vsel %vm248_vm1, 1.0, %v734_v31 }
  0x55   : > { %v612_v25 = vpop.eup %611  ;;  %v242_v29 = vsub.f32 %v237_v19, %v241_v24  ;;  %v251_v30 = vsel %vm248_vm1, 1.0, %v250_v27 }
  0x56   : > { %v614_v28 = vpop.eup %613  ;;  %v257_v33 = vadd.f32 1.0, %v612_v25 }
  0x57   : > { %v616_v34 = vpop.eup %615  ;;  %v266_v35 = vadd.f32 1.0, %v614_v28  ;;  %v243_v37 = vadd.f32 0.5, %v242_v29 }
  0x58   : > { %v618_v36 = vpop.eup %617  ;;  %619 = vrcp.f32 %v257_v33  ;;  %v274_v38 = vmul.f32 %v616_v34, %v251_v30 }
  0x59   : > { %621 = vrcp.f32 %v266_v35  ;;  %v279_v39 = vmul.f32 %v618_v36, %v252_v32  ;;  %v244_v40 = vmul.f32 0.125, %v243_v37 }
  0x5a   : > { %v843_v45 = vmul.f32 0.5, %v274_v38 }
  0x5b   : > { %v841_v41 = vmul.f32 %v279_v39, %v274_v38  ;;  %v245_v42 = vfloor.f32 %v244_v40  ;;  %v845_v47 = vmul.f32 0.5, %v279_v39 }
  0x5d   : > { %v246_v43 = vmul.f32 8.0, %v245_v42 }
  0x5f   : > { %v247_v44 = vsub.f32 %v242_v29, %v246_v43 }
  0x60   : > { %474 = sbr.rel (%p523_p11) target bundleno = 143 (0x8f), region = 106 }
  0x62   : > { %v620_v46 = vpop.eup %619 }
  0x63   : > { %v622_v48 = vpop.eup %621  ;;  %v847_v49 = vadd.f32 %v620_v46, %v247_v44 }
  0x64   : > { %v849_v50 = vadd.f32 %v622_v48, %v245_v42 }
  0x65   : > { %v281_v51 = vsub.f32 %v847_v49, %v843_v45  ;;  %v855_v52 = vadd.f32 %v843_v45, %v847_v49 }
  0x66   : > { %v284_v53 = vsub.f32 %v849_v50, %v845_v47  ;;  %v861_v54 = vadd.f32 %v845_v47, %v849_v50 }
  0x67 LB: >> { %s875_s25 = smul.u32 5, %s723_s24  ;;  %v735_v10 = vmov 0.0   ;;  %s290_s24 = sadd.s32 1, %s723_s24   ;;  %s723_s24 = sphi %s868_s24, %s290_s24   ;;  %v719_v56 = vphi %v866_v56, %v947_v56  }
  0x68   : >> { %p289_p12 = scmp.ge.s32.totalorder %s290_s24, %s818_s19 }
  0x69   : >> { %s295_s26 = sshra.s32 %s875_s25, 7  ;;  %s300_s27 = sand.u32 127, %s875_s25 }
  0x6a   : >> { %s297_s28 = sadd.s32 %s707_s30, %s295_s26  ;;  %s303_s7 = sadd.s32 1, %s875_s25 }
  0x6b   : >> { %s524_s8 = sshll.u32 %s297_s28, 7  ;;  %s304_s10 = sshra.s32 %s303_s7, 7 }
  0x6c   : >> { %s301_s11 = sadd.s32 %s524_s8, %s300_s27  ;;  %s306_s12 = sadd.s32 %s707_s30, %s304_s10 }
  0x6d   : >> { %s302_s13 = sld [smem:[#allocation3 + %s301_s11]]  ;;  %s525_s14 = sshll.u32 %s306_s12, 7 }
  0x6e   : >> { %s309_s15 = sand.u32 127, %s303_s7  ;;  %s312_s16 = sadd.s32 2, %s875_s25 }
  0x6f   : >> { %s310_s17 = sadd.s32 %s525_s14, %s309_s15  ;;  %s313_s18 = sshra.s32 %s312_s16, 7 }
  0x70   : >> { %s311_s20 = sld [smem:[#allocation3 + %s310_s17]]  ;;  %s315_s21 = sadd.s32 %s707_s30, %s313_s18 }
  0x71   : >> { %s526_s23 = sshll.u32 %s315_s21, 7  ;;  %s318_s0 = sand.u32 127, %s312_s16 }
  0x72   : >> { %s319_s26 = sadd.s32 %s526_s23, %s318_s0  ;;  %s321_s3 = sadd.s32 3, %s875_s25 }
  0x73   : >> { %s320_s4 = sld [smem:[#allocation3 + %s319_s26]]  ;;  %s322_s28 = sshra.s32 %s321_s3, 7  ;;  %v341_v57 = vstv %s302_s13 }
  0x74   : >> { %s324_s6 = sadd.s32 %s707_s30, %s322_s28  ;;  %s327_s27 = sand.u32 127, %s321_s3  ;;  %v342_v58 = vmax.f32 %v341_v57, %v281_v51 }
  0x75   : >> { %s527_s8 = sshll.u32 %s324_s6, 7  ;;  %s330_s10 = sadd.s32 4, %s875_s25 }
  0x76   : >> { %s328_s11 = sadd.s32 %s527_s8, %s327_s27  ;;  %s331_s12 = sshra.s32 %s330_s10, 7  ;;  %v347_v60 = vstv %s311_s20 }
  0x77   : >> { %s329_s7 = sld [smem:[#allocation3 + %s328_s11]]  ;;  %s333_s2 = sadd.s32 %s707_s30, %s331_s12  ;;  %v348_v63 = vmax.f32 %v347_v60, %v284_v53 }
  0x78   : >> { %s528_s14 = sshll.u32 %s333_s2, 7  ;;  %s336_s15 = sand.u32 127, %s330_s10 }
  0x79   : >> { %s337_s16 = sadd.s32 %s528_s14, %s336_s15  ;;  %v339_v59 = vstv %s320_s4 }
  0x7a   : >> { %s338_s17 = sld [smem:[#allocation3 + %s337_s16]]  ;;  %v340_v61 = vmin.f32 %v339_v59, %v855_v52 }
  0x7c   : >> { %v343_v62 = vsub.f32 %v340_v61, %v342_v58 }
  0x7d   : >> { %v345_v0 = vstv %s329_s7 }
  0x7e   : >> { %v346_v1 = vmin.f32 %v345_v0, %v861_v54  ;;  %v344_v2 = vmax.f32 %v343_v62, 0.0 }
  0x80   : >> { %v349_v3 = vsub.f32 %v346_v1, %v348_v63  ;;  %v352_v4 = vstv %s338_s17 }
  0x81   : >> { %v353_v6 = vadd.f32 %v352_v4, %v841_v41 }
  0x82   : >> { %v350_v5 = vmax.f32 %v349_v3, 0.0 }
  0x84   : >> { %v351_v7 = vmul.f32 %v350_v5, %v344_v2 }
  0x86   : >> { %v354_v8 = vsub.f32 %v353_v6, %v351_v7 }
  0x88   : >> { %v355_v9 = vmul.f32 0.5, %v354_v8  ;;  %292 = sbr.rel (!%p289_p12) target bundleno = 103 (0x67), region = 112 }
  0x8a   : >> { %vm356_vm3 = vcmp.gt.f32.partialorder %v351_v7, %v355_v9 }
  0x8b   : >> { %v529_v11 = vsel %vm356_vm3, 1.0, %v735_v10 }
  0x8c   : >> { %v359_v12 = vmax.f32 %v719_v56, %v529_v11  }
  0x8e   : >> { %v947_v56 = vmov %v359_v12  ;;  %v948_v55 = vmov (%p289_p12), %v359_v12 }
  0x8f PF: > { %s530_s3 = sshll.u32 %s707_s30, 7  ;;  %v535_v13 = vld [vmem:[%s821_s22 + $0x20] sm:$0xff]  ;;  %v390_v41 = vsub.f32 1.0, %v727_v55  ;;  %v727_v55 = vphi %v864_v55, %v948_v55  }
  0x90   : > { %s361_s4 = sld [smem:[#allocation5 + %s530_s3]]  ;;  %s367_s2 = sadd.s32 1, %s530_s3  ;;  %v394_v14 = vand.u32 2147483647, %v535_v13  ;;  %v403_v34 = vmax.f32 %v535_v13, 0.0  ;;  %v401_v36 = vmin.f32 %v535_v13, 0.0 }
  0x91   : > { %s368_s6 = sld [smem:[#allocation5 + %s367_s2]]  ;;  %s374_s25 = sadd.s32 2, %s530_s3  ;;  %v417_v52 = vld [vmem:[%s829_s1] sm:$0xff] }
  0x92   : > { %v395_v17 = vsub.f32 0.0, %v394_v14  ;;  %s375_s13 = sld [smem:[#allocation5 + %s374_s25]]  ;;  %s381_s18 = sadd.s32 3, %s530_s3  ;;  %v404_v37 = vsub.f32 0.0, %v403_v34 }
  0x93   : > { %s382_s19 = sld [smem:[#allocation5 + %s381_s18]] }
  0x94   : > { %v396_v18 = vmul.f32 1.442695, %v395_v17 }
  0x96   : > { %v362_v19 = vstv %s361_s4  ;;  %623 = vpow2.f32 %v396_v18 }
  0x97   : > { %vm363_vm4 = vcmp.eq.s32.totalorder %v833_v16, %v362_v19  ;;  %v369_v21 = vstv %s368_s6 }
  0x98   : > { %v531_v22 = vsel %vm363_vm4, 1.0, %v732_v15  ;;  %vm370_vm5 = vcmp.eq.s32.totalorder %v833_v16, %v369_v21  ;;  %v376_v23 = vstv %s375_s13 }
  0x99   : > { %v366_v24 = vmax.f32 %v531_v22, 0.0  ;;  %v532_v25 = vsel %vm370_vm5, 1.0, %v732_v15  ;;  %vm377_vm6 = vcmp.eq.s32.totalorder %v833_v16, %v376_v23  ;;  %v383_v26 = vstv %s382_s19 }
  0x9a   : > { %v533_v29 = vsel %vm377_vm6, 1.0, %v732_v15  ;;  %vm384_vm7 = vcmp.eq.s32.totalorder %v833_v16, %v383_v26 }
  0x9b   : > { %v373_v28 = vmax.f32 %v366_v24, %v532_v25  ;;  %v534_v32 = vsel %vm384_vm7, 1.0, %v732_v15 }
  0x9d   : > { %v380_v31 = vmax.f32 %v373_v28, %v533_v29 }
  0x9f   : > { %v387_v33 = vmax.f32 %v380_v31, %v534_v32 }
  0xa0   : > { %v624_v27 = vpop.eup %623 }
  0xa1   : > { %v398_v30 = vadd.f32 1.0, %v624_v27  ;;  %v388_v35 = vsub.f32 1.0, %v387_v33 }
  0xa3   : > { %625 = vlog2.f32 %v398_v30  ;;  %v389_v40 = vmul.f32 %v839_v20, %v388_v35 }
  0xa5   : > { %v391_v45 = vmul.f32 %v390_v41, %v389_v40 }
  0xa7   : > { %v414_v50 = vadd.f32 %v391_v45, %v387_v33 }
  0xad   : > { %v626_v38 = vpop.eup %625 }
  0xae   : > { %v400_v39 = vmul.f32 0.6931472, %v626_v38 }
  0xb0   : > { %v402_v42 = vsub.f32 %v401_v36, %v400_v39  ;;  %v405_v43 = vsub.f32 %v404_v37, %v400_v39 }
  0xb2   : > { %v406_v44 = vmax.f32 %v402_v42, -16.118095  ;;  %v408_v16 = vmax.f32 %v405_v43, -16.118095 }
  0xb4   : > { %v407_v46 = vmin.f32 %v406_v44, -1.0000001e-07  ;;  %v409_v47 = vmin.f32 %v408_v16, -1.0000001e-07 }
  0xb6   : > { %v410_v15 = vmul.f32 %v407_v46, %v387_v33  ;;  %v411_v48 = vmul.f32 %v409_v47, %v388_v35 }
  0xb8   : > { %v412_v49 = vadd.f32 %v411_v48, %v410_v15 }
  0xba   : > { %v413_v51 = vsub.f32 0.0, %v412_v49 }
  0xbc   : > { %v415_v53 = vmul.f32 %v414_v50, %v413_v51 }
  0xbe   : > { %v418_v54 = vadd.f32 %v417_v52, %v415_v53 }
  0xc0   : > { %419 = vst [vmem:[%s829_s1] sm:$0xff] %v418_v54 }
  0xc1 PF: > { %s28_s5 = sadd.s32 1, %s715_s5   ;;  %s949_s30 = sld [smem:[#allocation8_spill]] }
  0xc2   : > { %p25_p13 = scmp.ge.s32.totalorder %s28_s5, 4   ;;  %s950_s2 = sld [smem:[#allocation9_spill]] }
  0xc3   : > { %s951_s28 = smov %s703_s29  ;;  %s952_s29 = smov %s805_s9 }
  0xc4   :  { %27 = sbr.rel (!%p25_p13) target bundleno = 39 (0x27), region = 123 }

</bundles_post_ra>
